<compile_context>
chip_gen: v7x
topology: tpu7x:2x2x1
jax: 0.10.0
libtpu: 0.0.40
codegen_flags: <defaults>
</compile_context>

<pallas_src>
import math

import jax
import jax.numpy as jnp
from jax.experimental import pallas as pl
from jax.experimental.pallas import tpu as pltpu


# Matmul-input dtype for gbf_proj.layer1/2 and edge_proj.  bf16 operands run the
# MXU at full rate on v6e/v7x and halve operand VMEM; accumulation stays f32.
MXU_DTYPE = jnp.bfloat16

_GELU_C = math.sqrt(2.0 / math.pi)


def _gelu_tanh(x):
    # TODO(synk): PyTorch F.gelu defaults to the exact erf GELU; the tanh form used
    # here deviates by <~1e-3 absolute but costs a single EUP tanh per element.
    return 0.5 * x * (1.0 + jnp.tanh(_GELU_C * (x + 0.044715 * x * x * x)))


# ----------------------------- Pallas kernel --------------------------------


def graph3dbias_kernel(
    x_ref,          # [1, TI, N]  f32   mul*dist + bias (GaussianLayer affine, pre-fused)
    pad_lane_ref,   # [1, 1, N]   f32   1.0 where key/col node j is padding (lane layout)
    pad_sub_ref,    # [1, N, 1]   f32   same key mask, sublane layout (edge-sum weights)
    pad_row_ref,    # [1, TI, 1]  f32   this tile's query-row padding mask
    mean_ref,       # [1, K]      f32
    nhv_ref,        # [1, K]      f32   -0.5 / std^2
    inv_norm_ref,   # [1, K]      f32   1 / (sqrt(2*3.14159) * std)
    w1_ref,         # [K, H]      MXU_DTYPE  gbf_proj.layer1
    b1_ref,         # [1, H]      f32
    w2_ref,         # [H, NH]     MXU_DTYPE  gbf_proj.layer2
    b2_ref,         # [1, NH]     f32
    we_ref,         # [K, E]      MXU_DTYPE  edge_proj
    be_ref,         # [1, E]      f32
    gbf_out_ref,    # [1, NH, TI, N]  f32   attention bias, lane-dense over keys
    merge_out_ref,  # [1, TI, E]      f32
):
    x = x_ref[0]                                   # [TI, N]
    ti, n = x.shape
    k = mean_ref.shape[-1]

    mean = mean_ref[0]                             # [K]
    c = nhv_ref[0]                                 # [K]  -0.5 / std^2
    inv_norm = inv_norm_ref[0]                     # [K]  1 / (a * std)

    # GaussianLayer with divides hoisted to glue: g = inv_norm * exp(c * (x - mean)^2)
    d = x[:, :, None] - mean                       # [TI, N, K]
    g = inv_norm * jnp.exp(c * (d * d))            # [TI, N, K]  edge_feature

    # edge_proj branch: weight out padded key columns, sum over j, project.
    col_w = 1.0 - pad_sub_ref[0]                   # [N, 1]
    sum_ef = jnp.sum(g * col_w, axis=1)            # [TI, K]
    me = jnp.dot(sum_ef.astype(we_ref.dtype), we_ref[...],
                 preferred_element_type=jnp.float32) + be_ref[...]      # [TI, E]
    merge_out_ref[0] = jnp.where(pad_row_ref[0] > 0.5, 0.0, me)         # zero padded rows

    # gbf_proj (NonLinear): K -> H -> NH with GELU.
    gf = g.reshape(ti * n, k)
    h = jnp.dot(gf.astype(w1_ref.dtype), w1_ref[...],
                preferred_element_type=jnp.float32) + b1_ref[...]
    h = _gelu_tanh(h)
    heads = jnp.dot(h.astype(w2_ref.dtype), w2_ref[...],
                    preferred_element_type=jnp.float32) + b2_ref[...]   # [TI*N, NH]

    # Emit [NH, TI, N] so the HBM store is lane-dense over keys (no glue transpose).
    heads_t = heads.T.reshape(heads.shape[-1], ti, n)                   # [NH, TI, N]
    col_pad = pad_lane_ref[0]                                           # [1, N]
    gbf_out_ref[0] = jnp.where(col_pad[None, :, :] > 0.5, -jnp.inf, heads_t)


# --------------------------- tiling / VMEM sizing ----------------------------


def _tile_vmem_bytes(ti, n, k, h, nh, e):
    rows = ti * n
    inter = rows * ((k + h) * 6 + nh * 8 + 16)          # g/h (f32 + bf16 copies), heads (+T)
    io = 2 * rows * 4 + 2 * nh * rows * 4 + 2 * ti * e * 4
    consts = 2 * 2 * (k * h + h * nh + k * e) + 2 * 4 * (3 * k + h + nh + e)
    return inter + io + consts


def _choose_row_tile(n, k, h, nh, e, budget=20 << 20):
    """Largest TI (multiple of 8, divides n, <=256) whose tile footprint fits budget."""
    ti = 8
    for t in range(8, min(n, 256) + 1, 8):
        if n % t == 0 and _tile_vmem_bytes(t, n, k, h, nh, e) <= budget:
            ti = t
    return ti


# ------------------------------ pallas wrapper --------------------------------


def graph3dbias_pallas(x_affine, pad_mask_f, params):
    """x_affine: [B, N, N] f32 (= mul*dist + bias); pad_mask_f: [B, N] f32 (1.0 = padded)."""
    B, N = x_affine.shape[0], x_affine.shape[1]
    K = params["means"].shape[-1]
    H = params["w1"].shape[-1]
    NH = params["w2"].shape[-1]
    E = params["we"].shape[-1]

    # Pad node axes to a multiple of 8 so in-kernel reshapes are pure views and the
    # (8, 128) block constraints hold; padded nodes are marked as padding.
    N_pad = max(8, -(-N // 8) * 8)
    if N_pad != N:
        p = N_pad - N
        x_affine = jnp.pad(x_affine, ((0, 0), (0, p), (0, p)))
        pad_mask_f = jnp.pad(pad_mask_f, ((0, 0), (0, p)), constant_values=1.0)

    TI = _choose_row_tile(N_pad, K, H, NH, E)
    NT = N_pad // TI

    # Gaussian constants with the per-element divides hoisted out of the kernel.
    std = jnp.abs(params["stds"]) + 0.3                        # [1, K]
    a = (2.0 * 3.14159) ** 0.5                                 # matches the jit.script constant
    mean = params["means"].astype(jnp.float32)
    inv_norm = (1.0 / (a * std)).astype(jnp.float32)
    neg_half_inv_var = (-0.5 / (std * std)).astype(jnp.float32)

    w1 = params["w1"].astype(MXU_DTYPE)
    w2 = params["w2"].astype(MXU_DTYPE)
    we = params["we"].astype(MXU_DTYPE)

    pad_lane = pad_mask_f[:, None, :]                          # [B, 1, N_pad]
    pad_sub = pad_mask_f[:, :, None]                           # [B, N_pad, 1]

    def const_spec(shape):
        nd = len(shape)
        return pl.BlockSpec(shape, lambda b, i, _nd=nd: (0,) * _nd)

    grid_spec = pltpu.PrefetchScalarGridSpec(
        num_scalar_prefetch=0,
        grid=(B, NT),
        in_specs=[
            pl.BlockSpec((1, TI, N_pad), lambda b, i: (b, i, 0)),   # x (fused affine)
            pl.BlockSpec((1, 1, N_pad), lambda b, i: (b, 0, 0)),    # key pad, lane layout
            pl.BlockSpec((1, N_pad, 1), lambda b, i: (b, 0, 0)),    # key pad, sublane layout
            pl.BlockSpec((1, TI, 1), lambda b, i: (b, i, 0)),       # query-row pad (tile)
            const_spec((1, K)),    # mean
            const_spec((1, K)),    # -0.5 / std^2
            const_spec((1, K)),    # 1 / (a*std)
            const_spec((K, H)),    # w1
            const_spec((1, H)),    # b1
            const_spec((H, NH)),   # w2
            const_spec((1, NH)),   # b2
            const_spec((K, E)),    # we
            const_spec((1, E)),    # be
        ],
        out_specs=[
            pl.BlockSpec((1, NH, TI, N_pad), lambda b, i: (b, 0, i, 0)),
            pl.BlockSpec((1, TI, E), lambda b, i: (b, i, 0)),
        ],
    )

    # Raise the scoped VMEM limit only as far as the chosen tiles need (cap below the
    # v7x ~48 MiB ceiling; v5e/v6e have more headroom but do not need it here).
    vmem_limit = int(min(48 << 20,
                         max(32 << 20, 2 * _tile_vmem_bytes(TI, N_pad, K, H, NH, E))))

    gbf, merge = pl.pallas_call(
        graph3dbias_kernel,
        out_shape=(
            jax.ShapeDtypeStruct((B, NH, N_pad, N_pad), jnp.float32),
            jax.ShapeDtypeStruct((B, N_pad, E), jnp.float32),
        ),
        grid_spec=grid_spec,
        compiler_params=pltpu.CompilerParams(
            dimension_semantics=("parallel", "parallel"),
            vmem_limit_bytes=vmem_limit,
        ),
    )(x_affine, pad_lane, pad_sub, pad_sub, mean, neg_half_inv_var, inv_norm,
      w1, params["b1"], w2, params["b2"], we, params["be"])

    if N_pad != N:
        gbf = gbf[:, :, :N, :N]
        merge = merge[:, :N, :]
    return gbf, merge


# ------------------------------- glue / wrapper ------------------------------


def init_params(key, K, H, NH, E, num_edges):
    ks = jax.random.split(key, 8)
    means = jax.random.uniform(ks[0], (1, K), jnp.float32, 0.0, 3.0)
    stds = jax.random.uniform(ks[1], (1, K), jnp.float32, 0.0, 3.0)
    # nn.init.constant_ overwrites every row (including padding_idx=0)
    mul_table = jnp.ones((num_edges, 1), jnp.float32)
    bias_table = jnp.zeros((num_edges, 1), jnp.float32)

    def linear(k, fan_in, fan_out):
        k1, k2 = jax.random.split(k)
        bound = 1.0 / math.sqrt(fan_in)
        w = jax.random.uniform(k1, (fan_in, fan_out), jnp.float32, -bound, bound)
        b = jax.random.uniform(k2, (1, fan_out), jnp.float32, -bound, bound)
        return w, b

    w1, b1 = linear(ks[2], K, H)     # gbf_proj.layer1
    w2, b2 = linear(ks[3], H, NH)    # gbf_proj.layer2
    we, be = linear(ks[4], K, E)     # edge_proj
    return dict(means=means, stds=stds, mul_table=mul_table, bias_table=bias_table,
                w1=w1, b1=b1, w2=w2, b2=b2, we=we, be=be)


def graph3d_bias_forward(params, x, pos, cutoff):
    """x: [B, N, F] int node features; pos: [B, N, 3] float32.  Non-PBC branch."""
    padding_mask = jnp.all(x == 0, axis=-1)                           # [B, N] bool

    # delta_pos[b, i, j] = pos[b, j] - pos[b, i]   (unsqueeze(1) - unsqueeze(2))
    delta_pos_raw = pos[:, None, :, :] - pos[:, :, None, :]           # [B, N, N, 3]
    dist = jnp.sqrt(jnp.sum(delta_pos_raw * delta_pos_raw, axis=-1))  # [B, N, N]

    # polynomial cutoff attention mask (non-PBC branch)
    ratio = dist / cutoff
    attn_mask = jnp.maximum(
        1.0 - 6.0 * ratio**5 + 15.0 * ratio**4 - 10.0 * ratio**3, 0.0)

    delta_pos = delta_pos_raw / (dist[..., None] + 0.01)

    atomic_numbers = x[:, :, 0]
    node_type_edge = (atomic_numbers[:, :, None] * 128
                      + atomic_numbers[:, None, :])[..., None]        # [B, N, N, 1]
    nte = node_type_edge.astype(jnp.int32)

    # GaussianLayer embedding lookups + affine fused in glue -> single [B, N, N] input.
    # NOTE: JAX gathers clamp out-of-range indices silently; size mul/bias tables to
    # cover max(node_type_edge) just as the PyTorch embedding requires.
    mul = params["mul_table"][nte[..., 0]][..., 0]                    # [B, N, N]
    bias = params["bias_table"][nte[..., 0]][..., 0]                  # [B, N, N]
    x_affine = (mul * dist + bias).astype(jnp.float32)

    pad_f = padding_mask.astype(jnp.float32)                          # [B, N]

    graph_attn_bias, merge_edge_features = graph3dbias_pallas(x_affine, pad_f, params)

    return graph_attn_bias, merge_edge_features, delta_pos, node_type_edge, attn_mask


# ----------------------------------- main ------------------------------------


if __name__ == "__main__":
    # Graphormer config (small): heads=4, layers=3 -> NH = 4*(3+1) = 16
    K = 128            # num_3d_bias_kernel
    H = K              # NonLinear hidden (defaults to input)
    NH = 16            # num_attention_heads * (num_encoder_layers + 1)
    E = 32             # embedding_dim
    NUM_EDGES = 512 * 3
    CUTOFF = 5.0       # pbc_multigraph_cutoff

    B, N, F = 2, 8, 3

    key = jax.random.PRNGKey(0)
    kx, kpos, kparam = jax.random.split(key, 3)

    x = jax.random.randint(kx, (B, N, F), 1, 10, dtype=jnp.int32)
    x = x.at[1, N - 1, :].set(0)  # one padded node in graph 1
    pos = jax.random.normal(kpos, (B, N, 3), jnp.float32) * 3.0
    pos = jnp.where(jnp.all(x == 0, axis=-1)[..., None], 0.0, pos)

    params = init_params(kparam, K, H, NH, E, NUM_EDGES)

    outs = graph3d_bias_forward(params, x, pos, CUTOFF)
    jax.block_until_ready(outs)

    gab, mef, dpos, nte, am = outs
    assert gab.shape == (B, NH, N, N)
    assert mef.shape == (B, N, E)
    assert dpos.shape == (B, N, N, 3)
    assert nte.shape == (B, N, N, 1)
    assert am.shape == (B, N, N)
    assert bool(jnp.all(jnp.isfinite(mef)))
    assert bool(jnp.all(jnp.isfinite(gab[0])))                 # graph 0 has no padding
    assert bool(jnp.all(jnp.isinf(gab[1, :, :, N - 1])))       # padded key column -> -inf
    assert bool(jnp.all(mef[1, N - 1] == 0.0))                 # padded query row zeroed
    print("KERNEL_OK")
</pallas_src>

<mosaic_0001>
module attributes {stable_mosaic.version = 11 : i64} {
  func.func @graph3dbias_kernel(%arg0: i32, %arg1: i32, %arg2: memref<1x8x8xf32, #tpu.memory_space<vmem>>, %arg3: memref<1x1x8xf32, #tpu.memory_space<vmem>>, %arg4: memref<1x8x1xf32, #tpu.memory_space<vmem>>, %arg5: memref<1x8x1xf32, #tpu.memory_space<vmem>>, %arg6: memref<1x128xf32, #tpu.memory_space<vmem>>, %arg7: memref<1x128xf32, #tpu.memory_space<vmem>>, %arg8: memref<1x128xf32, #tpu.memory_space<vmem>>, %arg9: memref<128x128xbf16, #tpu.memory_space<vmem>>, %arg10: memref<1x128xf32, #tpu.memory_space<vmem>>, %arg11: memref<128x16xbf16, #tpu.memory_space<vmem>>, %arg12: memref<1x16xf32, #tpu.memory_space<vmem>>, %arg13: memref<128x32xbf16, #tpu.memory_space<vmem>>, %arg14: memref<1x32xf32, #tpu.memory_space<vmem>>, %arg15: memref<1x16x8x8xf32, #tpu.memory_space<vmem>>, %arg16: memref<1x8x32xf32, #tpu.memory_space<vmem>>) attributes {dimension_semantics = [#tpu.dimension_semantics<parallel>, #tpu.dimension_semantics<parallel>], iteration_bounds = array<i64: 2, 1>, scalar_prefetch = 0 : i64, scratch_operands = 0 : i64, tpu.core_type = #tpu.core_type<tc>, window_params = [{transform_indices = @transform_0, window_bounds = array<i64: 1, 8, 8>}, {transform_indices = @transform_1, window_bounds = array<i64: 1, 1, 8>}, {transform_indices = @transform_2, window_bounds = array<i64: 1, 8, 1>}, {transform_indices = @transform_3, window_bounds = array<i64: 1, 8, 1>}, {pipeline_mode = #tpu.pipeline_mode<synchronous>, transform_indices = @transform_4, window_bounds = array<i64: 1, 128>}, {pipeline_mode = #tpu.pipeline_mode<synchronous>, transform_indices = @transform_5, window_bounds = array<i64: 1, 128>}, {pipeline_mode = #tpu.pipeline_mode<synchronous>, transform_indices = @transform_6, window_bounds = array<i64: 1, 128>}, {pipeline_mode = #tpu.pipeline_mode<synchronous>, transform_indices = @transform_7, window_bounds = array<i64: 128, 128>}, {pipeline_mode = #tpu.pipeline_mode<synchronous>, transform_indices = @transform_8, window_bounds = array<i64: 1, 128>}, {pipeline_mode = #tpu.pipeline_mode<synchronous>, transform_indices = @transform_9, window_bounds = array<i64: 128, 16>}, {pipeline_mode = #tpu.pipeline_mode<synchronous>, transform_indices = @transform_10, window_bounds = array<i64: 1, 16>}, {pipeline_mode = #tpu.pipeline_mode<synchronous>, transform_indices = @transform_11, window_bounds = array<i64: 128, 32>}, {pipeline_mode = #tpu.pipeline_mode<synchronous>, transform_indices = @transform_12, window_bounds = array<i64: 1, 32>}, {transform_indices = @transform_13, window_bounds = array<i64: 1, 16, 8, 8>}, {transform_indices = @transform_14, window_bounds = array<i64: 1, 8, 32>}]} {
    %c0 = arith.constant 0 : index
    %c0_0 = arith.constant 0 : index
    %c0_1 = arith.constant 0 : index
    %0 = vector.load %arg2[%c0, %c0_0, %c0_1] : memref<1x8x8xf32, #tpu.memory_space<vmem>>, vector<1x8x8xf32>
    %1 = vector.shape_cast %0 : vector<1x8x8xf32> to vector<8x8xf32>
    %c0_2 = arith.constant 0 : index
    %c0_3 = arith.constant 0 : index
    %2 = vector.load %arg6[%c0_2, %c0_3] : memref<1x128xf32, #tpu.memory_space<vmem>>, vector<1x128xf32>
    %3 = vector.shape_cast %2 : vector<1x128xf32> to vector<128xf32>
    %c0_4 = arith.constant 0 : index
    %c0_5 = arith.constant 0 : index
    %4 = vector.load %arg7[%c0_4, %c0_5] : memref<1x128xf32, #tpu.memory_space<vmem>>, vector<1x128xf32>
    %5 = vector.shape_cast %4 : vector<1x128xf32> to vector<128xf32>
    %c0_6 = arith.constant 0 : index
    %c0_7 = arith.constant 0 : index
    %6 = vector.load %arg8[%c0_6, %c0_7] : memref<1x128xf32, #tpu.memory_space<vmem>>, vector<1x128xf32>
    %7 = vector.shape_cast %6 : vector<1x128xf32> to vector<128xf32>
    %8 = vector.shape_cast %1 : vector<8x8xf32> to vector<8x8x1xf32>
    %9 = vector.shape_cast %3 : vector<128xf32> to vector<1x1x128xf32>
    %10 = vector.broadcast %8 : vector<8x8x1xf32> to vector<8x8x128xf32>
    %11 = vector.broadcast %9 : vector<1x1x128xf32> to vector<8x8x128xf32>
    %12 = arith.subf %10, %11 : vector<8x8x128xf32>
    %13 = arith.mulf %12, %12 : vector<8x8x128xf32>
    %14 = vector.shape_cast %5 : vector<128xf32> to vector<1x1x128xf32>
    %15 = vector.broadcast %14 : vector<1x1x128xf32> to vector<8x8x128xf32>
    %16 = arith.mulf %15, %13 : vector<8x8x128xf32>
    %17 = math.exp %16 : vector<8x8x128xf32>
    %18 = vector.shape_cast %7 : vector<128xf32> to vector<1x1x128xf32>
    %19 = vector.broadcast %18 : vector<1x1x128xf32> to vector<8x8x128xf32>
    %20 = arith.mulf %19, %17 : vector<8x8x128xf32>
    %c0_8 = arith.constant 0 : index
    %c0_9 = arith.constant 0 : index
    %c0_10 = arith.constant 0 : index
    %21 = vector.load %arg4[%c0_8, %c0_9, %c0_10] : memref<1x8x1xf32, #tpu.memory_space<vmem>>, vector<1x8x1xf32>
    %22 = vector.shape_cast %21 : vector<1x8x1xf32> to vector<8x1xf32>
    %cst = arith.constant 1.000000e+00 : f32
    %23 = vector.broadcast %cst : f32 to vector<8x1xf32>
    %24 = arith.subf %23, %22 : vector<8x1xf32>
    %25 = vector.shape_cast %24 : vector<8x1xf32> to vector<1x8x1xf32>
    %26 = vector.broadcast %25 : vector<1x8x1xf32> to vector<8x8x128xf32>
    %27 = arith.mulf %20, %26 : vector<8x8x128xf32>
    %cst_11 = arith.constant dense<0.000000e+00> : vector<8x128xf32>
    %28 = vector.multi_reduction <add>, %27, %cst_11 [1] : vector<8x8x128xf32> to vector<8x128xf32>
    %29 = arith.truncf %28 : vector<8x128xf32> to vector<8x128xbf16>
    %c0_12 = arith.constant 0 : index
    %c0_13 = arith.constant 0 : index
    %30 = vector.load %arg13[%c0_12, %c0_13] : memref<128x32xbf16, #tpu.memory_space<vmem>>, vector<128x32xbf16>
    %cst_14 = arith.constant dense<0.000000e+00> : vector<8x32xf32>
    %31 = tpu.matmul %29, %30, %cst_14 {dimension_numbers = #tpu.dot_dimension_numbers<[1], [0], [0], [1], [0, 0, 1, 1], [], []>} : vector<8x128xbf16>, vector<128x32xbf16>, vector<8x32xf32> -> vector<8x32xf32>
    %c0_15 = arith.constant 0 : index
    %c0_16 = arith.constant 0 : index
    %32 = vector.load %arg14[%c0_15, %c0_16] : memref<1x32xf32, #tpu.memory_space<vmem>>, vector<1x32xf32>
    %33 = vector.broadcast %32 : vector<1x32xf32> to vector<8x32xf32>
    %34 = arith.addf %31, %33 : vector<8x32xf32>
    %c0_17 = arith.constant 0 : index
    %c0_18 = arith.constant 0 : index
    %c0_19 = arith.constant 0 : index
    %35 = vector.load %arg5[%c0_17, %c0_18, %c0_19] : memref<1x8x1xf32, #tpu.memory_space<vmem>>, vector<1x8x1xf32>
    %36 = vector.shape_cast %35 : vector<1x8x1xf32> to vector<8x1xf32>
    %cst_20 = arith.constant 5.000000e-01 : f32
    %37 = vector.broadcast %cst_20 : f32 to vector<8x1xf32>
    %38 = arith.cmpf ogt, %36, %37 : vector<8x1xf32>
    %cst_21 = arith.constant 0.000000e+00 : f32
    %39 = vector.shape_cast %38 : vector<8x1xi1> to vector<8x1xi1>
    %40 = vector.broadcast %39 : vector<8x1xi1> to vector<8x32xi1>
    %41 = vector.broadcast %cst_21 : f32 to vector<8x32xf32>
    %42 = arith.select %40, %41, %34 : vector<8x32xi1>, vector<8x32xf32>
    %c0_22 = arith.constant 0 : index
    %c0_23 = arith.constant 0 : index
    %c0_24 = arith.constant 0 : index
    %43 = vector.load %arg16[%c0_22, %c0_23, %c0_24] : memref<1x8x32xf32, #tpu.memory_space<vmem>>, vector<1x8x32xf32>
    %44 = vector.shape_cast %43 : vector<1x8x32xf32> to vector<8x32xf32>
    %45 = vector.shape_cast %42 : vector<8x32xf32> to vector<1x8x32xf32>
    tpu.vector_store %arg16[%c0_22, %c0_23, %c0_24], %45 {strides = array<i32>} : memref<1x8x32xf32, #tpu.memory_space<vmem>>, vector<1x8x32xf32>,
    %46 = vector.shape_cast %20 : vector<8x8x128xf32> to vector<64x128xf32>
    %47 = arith.truncf %46 : vector<64x128xf32> to vector<64x128xbf16>
    %c0_25 = arith.constant 0 : index
    %c0_26 = arith.constant 0 : index
    %48 = vector.load %arg9[%c0_25, %c0_26] : memref<128x128xbf16, #tpu.memory_space<vmem>>, vector<128x128xbf16>
    %cst_27 = arith.constant dense<0.000000e+00> : vector<64x128xf32>
    %49 = tpu.matmul %47, %48, %cst_27 {dimension_numbers = #tpu.dot_dimension_numbers<[1], [0], [0], [1], [0, 0, 1, 1], [], []>} : vector<64x128xbf16>, vector<128x128xbf16>, vector<64x128xf32> -> vector<64x128xf32>
    %c0_28 = arith.constant 0 : index
    %c0_29 = arith.constant 0 : index
    %50 = vector.load %arg10[%c0_28, %c0_29] : memref<1x128xf32, #tpu.memory_space<vmem>>, vector<1x128xf32>
    %51 = vector.broadcast %50 : vector<1x128xf32> to vector<64x128xf32>
    %52 = arith.addf %49, %51 : vector<64x128xf32>
    %cst_30 = arith.constant 5.000000e-01 : f32
    %53 = vector.broadcast %cst_30 : f32 to vector<64x128xf32>
    %54 = arith.mulf %53, %52 : vector<64x128xf32>
    %cst_31 = arith.constant 4.471500e-02 : f32
    %55 = vector.broadcast %cst_31 : f32 to vector<64x128xf32>
    %56 = arith.mulf %55, %52 : vector<64x128xf32>
    %57 = arith.mulf %56, %52 : vector<64x128xf32>
    %58 = arith.mulf %57, %52 : vector<64x128xf32>
    %59 = arith.addf %52, %58 : vector<64x128xf32>
    %cst_32 = arith.constant 0.797884583 : f32
    %60 = vector.broadcast %cst_32 : f32 to vector<64x128xf32>
    %61 = arith.mulf %60, %59 : vector<64x128xf32>
    %62 = math.tanh %61 : vector<64x128xf32>
    %cst_33 = arith.constant 1.000000e+00 : f32
    %63 = vector.broadcast %cst_33 : f32 to vector<64x128xf32>
    %64 = arith.addf %63, %62 : vector<64x128xf32>
    %65 = arith.mulf %54, %64 : vector<64x128xf32>
    %66 = arith.truncf %65 : vector<64x128xf32> to vector<64x128xbf16>
    %c0_34 = arith.constant 0 : index
    %c0_35 = arith.constant 0 : index
    %67 = vector.load %arg11[%c0_34, %c0_35] : memref<128x16xbf16, #tpu.memory_space<vmem>>, vector<128x16xbf16>
    %cst_36 = arith.constant dense<0.000000e+00> : vector<64x16xf32>
    %68 = tpu.matmul %66, %67, %cst_36 {dimension_numbers = #tpu.dot_dimension_numbers<[1], [0], [0], [1], [0, 0, 1, 1], [], []>} : vector<64x128xbf16>, vector<128x16xbf16>, vector<64x16xf32> -> vector<64x16xf32>
    %c0_37 = arith.constant 0 : index
    %c0_38 = arith.constant 0 : index
    %69 = vector.load %arg12[%c0_37, %c0_38] : memref<1x16xf32, #tpu.memory_space<vmem>>, vector<1x16xf32>
    %70 = vector.broadcast %69 : vector<1x16xf32> to vector<64x16xf32>
    %71 = arith.addf %68, %70 : vector<64x16xf32>
    %72 = tpu.transpose %71, [1, 0] : vector<64x16xf32> -> vector<16x64xf32>
    %73 = vector.shape_cast %72 : vector<16x64xf32> to vector<16x8x8xf32>
    %c0_39 = arith.constant 0 : index
    %c0_40 = arith.constant 0 : index
    %c0_41 = arith.constant 0 : index
    %74 = vector.load %arg3[%c0_39, %c0_40, %c0_41] : memref<1x1x8xf32, #tpu.memory_space<vmem>>, vector<1x1x8xf32>
    %75 = vector.shape_cast %74 : vector<1x1x8xf32> to vector<1x8xf32>
    %76 = vector.shape_cast %75 : vector<1x8xf32> to vector<1x1x8xf32>
    %cst_42 = arith.constant 5.000000e-01 : f32
    %77 = vector.broadcast %cst_42 : f32 to vector<1x1x8xf32>
    %78 = arith.cmpf ogt, %76, %77 : vector<1x1x8xf32>
    %cst_43 = arith.constant 0xFF800000 : f32
    %79 = vector.shape_cast %78 : vector<1x1x8xi1> to vector<1x1x8xi1>
    %80 = vector.broadcast %79 : vector<1x1x8xi1> to vector<16x8x8xi1>
    %81 = vector.broadcast %cst_43 : f32 to vector<16x8x8xf32>
    %82 = arith.select %80, %81, %73 : vector<16x8x8xi1>, vector<16x8x8xf32>
    %c0_44 = arith.constant 0 : index
    %c0_45 = arith.constant 0 : index
    %c0_46 = arith.constant 0 : index
    %c0_47 = arith.constant 0 : index
    %83 = vector.load %arg15[%c0_44, %c0_45, %c0_46, %c0_47] : memref<1x16x8x8xf32, #tpu.memory_space<vmem>>, vector<1x16x8x8xf32>
    %84 = vector.shape_cast %83 : vector<1x16x8x8xf32> to vector<16x8x8xf32>
    %85 = vector.shape_cast %82 : vector<16x8x8xf32> to vector<1x16x8x8xf32>
    tpu.vector_store %arg15[%c0_44, %c0_45, %c0_46, %c0_47], %85 {strides = array<i32>} : memref<1x16x8x8xf32, #tpu.memory_space<vmem>>, vector<1x16x8x8xf32>,
    return
  }
  func.func @transform_0(%arg0: i32, %arg1: i32) -> (i32, i32, i32) {
    %c0_i32 = arith.constant 0 : i32
    %c0_i32_0 = arith.constant 0 : i32
    return %arg0, %arg1, %c0_i32 : i32, i32, i32
  }
  func.func @transform_1(%arg0: i32, %arg1: i32) -> (i32, i32, i32) {
    %c0_i32 = arith.constant 0 : i32
    %c0_i32_0 = arith.constant 0 : i32
    %c0_i32_1 = arith.constant 0 : i32
    return %arg0, %c0_i32, %c0_i32_0 : i32, i32, i32
  }
  func.func @transform_2(%arg0: i32, %arg1: i32) -> (i32, i32, i32) {
    %c0_i32 = arith.constant 0 : i32
    %c0_i32_0 = arith.constant 0 : i32
    %c0_i32_1 = arith.constant 0 : i32
    return %arg0, %c0_i32, %c0_i32_0 : i32, i32, i32
  }
  func.func @transform_3(%arg0: i32, %arg1: i32) -> (i32, i32, i32) {
    %c0_i32 = arith.constant 0 : i32
    %c0_i32_0 = arith.constant 0 : i32
    return %arg0, %arg1, %c0_i32 : i32, i32, i32
  }
  func.func @transform_4(%arg0: i32, %arg1: i32) -> (i32, i32) {
    %c0_i32 = arith.constant 0 : i32
    %c0_i32_0 = arith.constant 0 : i32
    %c0_i32_1 = arith.constant 0 : i32
    return %c0_i32, %c0_i32_0 : i32, i32
  }
  func.func @transform_5(%arg0: i32, %arg1: i32) -> (i32, i32) {
    %c0_i32 = arith.constant 0 : i32
    %c0_i32_0 = arith.constant 0 : i32
    %c0_i32_1 = arith.constant 0 : i32
    return %c0_i32, %c0_i32_0 : i32, i32
  }
  func.func @transform_6(%arg0: i32, %arg1: i32) -> (i32, i32) {
    %c0_i32 = arith.constant 0 : i32
    %c0_i32_0 = arith.constant 0 : i32
    %c0_i32_1 = arith.constant 0 : i32
    return %c0_i32, %c0_i32_0 : i32, i32
  }
  func.func @transform_7(%arg0: i32, %arg1: i32) -> (i32, i32) {
    %c0_i32 = arith.constant 0 : i32
    %c0_i32_0 = arith.constant 0 : i32
    %c0_i32_1 = arith.constant 0 : i32
    return %c0_i32, %c0_i32_0 : i32, i32
  }
  func.func @transform_8(%arg0: i32, %arg1: i32) -> (i32, i32) {
    %c0_i32 = arith.constant 0 : i32
    %c0_i32_0 = arith.constant 0 : i32
    %c0_i32_1 = arith.constant 0 : i32
    return %c0_i32, %c0_i32_0 : i32, i32
  }
  func.func @transform_9(%arg0: i32, %arg1: i32) -> (i32, i32) {
    %c0_i32 = arith.constant 0 : i32
    %c0_i32_0 = arith.constant 0 : i32
    %c0_i32_1 = arith.constant 0 : i32
    return %c0_i32, %c0_i32_0 : i32, i32
  }
  func.func @transform_10(%arg0: i32, %arg1: i32) -> (i32, i32) {
    %c0_i32 = arith.constant 0 : i32
    %c0_i32_0 = arith.constant 0 : i32
    %c0_i32_1 = arith.constant 0 : i32
    return %c0_i32, %c0_i32_0 : i32, i32
  }
  func.func @transform_11(%arg0: i32, %arg1: i32) -> (i32, i32) {
    %c0_i32 = arith.constant 0 : i32
    %c0_i32_0 = arith.constant 0 : i32
    %c0_i32_1 = arith.constant 0 : i32
    return %c0_i32, %c0_i32_0 : i32, i32
  }
  func.func @transform_12(%arg0: i32, %arg1: i32) -> (i32, i32) {
    %c0_i32 = arith.constant 0 : i32
    %c0_i32_0 = arith.constant 0 : i32
    %c0_i32_1 = arith.constant 0 : i32
    return %c0_i32, %c0_i32_0 : i32, i32
  }
  func.func @transform_13(%arg0: i32, %arg1: i32) -> (i32, i32, i32, i32) {
    %c0_i32 = arith.constant 0 : i32
    %c0_i32_0 = arith.constant 0 : i32
    %c0_i32_1 = arith.constant 0 : i32
    return %arg0, %c0_i32, %arg1, %c0_i32_0 : i32, i32, i32, i32
  }
  func.func @transform_14(%arg0: i32, %arg1: i32) -> (i32, i32, i32) {
    %c0_i32 = arith.constant 0 : i32
    %c0_i32_0 = arith.constant 0 : i32
    return %arg0, %arg1, %c0_i32 : i32, i32, i32
  }
}

</mosaic_0001>

<bundles_post_ra>
// kernel: tpu_custom_call.1
= control target key start
LH: loop header
LB: loop body
LE: loop exit
PB: predicated region body
PF: predicated region fallthrough
CT: control target
= control target key end

     0   :  { %s2693_s0 = inlined_call_operand.vmem [shape: f32[2,8,8], index: 0, kind: input, shape index: {}]   ;;  %s2694_s1 = inlined_call_operand.vmem [shape: f32[2,1,8], index: 1, kind: input, shape index: {}]   ;;  %s2695_s2 = inlined_call_operand.vmem [shape: f32[2,8,1], index: 2, kind: input, shape index: {}]   ;;  %s2696_s3 = inlined_call_operand.vmem [shape: f32[2,8,1], index: 3, kind: input, shape index: {}]   ;;  %s2697_s4 = inlined_call_operand.vmem [shape: f32[1,128], index: 4, kind: input, shape index: {}]   ;;  %s2698_s5 = inlined_call_operand.vmem [shape: f32[1,128], index: 5, kind: input, shape index: {}]   ;;  %s2699_s6 = inlined_call_operand.vmem [shape: f32[1,128], index: 6, kind: input, shape index: {}]   ;;  %s2700_s7 = inlined_call_operand.vmem [shape: bf16[128,128], index: 7, kind: input, shape index: {}]   ;;  %s2701_s8 = inlined_call_operand.vmem [shape: f32[1,128], index: 8, kind: input, shape index: {}]   ;;  %s2702_s9 = inlined_call_operand.vmem [shape: bf16[128,16], index: 9, kind: input, shape index: {}]   ;;  %s2703_s10 = inlined_call_operand.vmem [shape: f32[1,16], index: 10, kind: input, shape index: {}]   ;;  %s2704_s11 = inlined_call_operand.vmem [shape: bf16[128,32], index: 11, kind: input, shape index: {}]   ;;  %s2705_s12 = inlined_call_operand.vmem [shape: f32[1,32], index: 12, kind: input, shape index: {}]   ;;  %s2706_s13 = inlined_call_operand.vmem [shape: f32[2,16,8,8], index: 13, kind: output, shape index: {0}]   ;;  %s2707_s14 = inlined_call_operand.hbm [shape: f32[2,8,32], index: 14, kind: output, shape index: {1}]  }
   0x1   :  { %2711 = sst [smem:[#allocation9_spill]] %s2693_s0 }
   0x2   :  { %2712 = sst [smem:[#allocation10_spill]] %s2694_s1 }
   0x3   :  { %20 = vsyncpa [#allocation3], 0 }
   0x4   :  { %22 = vsyncpa [#allocation3 + $0x1], 0  ;;  %s2284_s29 = smov 0   ;;  %s2286_s30 = smov 0  }
   0x5   :  { %s2288_s15 = smov 0   ;;  %s2290_s16 = smov 0  }
   0x6   :  { %s2292_s17 = smov 0   ;;  %s2294_s18 = smov 0  }
   0x7 LB: > { %2713 = sst [smem:[#allocation5_spill]] %s2182_s15  ;;  %s1829_s19 = sadd.s32 4294967295, %s2194_s18   ;;  %s2194_s18 = sphi %s2294_s18, %s28_s18   ;;  %s2190_s17 = sphi %s2292_s17, %s2724_s17   ;;  %s2186_s16 = sphi %s2290_s16, %s2723_s16   ;;  %s2182_s15 = sphi %s2288_s15, %s2722_s15   ;;  %s2178_s30 = sphi %s2286_s30, %s2726_s30   ;;  %s2174_s29 = sphi %s2284_s29, %s2725_s29  }
   0x8   : > { %2714 = sst [smem:[#allocation6_spill]] %s2190_s17  ;;  %s1830_s20 = sadd.s32 4294967294, %s2194_s18  }
   0x9   : > { %s40_s21 = sadd.s32 1, %s2190_s17  ;;  %s374_s22 = sadd.s32 1, %s2182_s15 }
   0xa   : > { %p42_p0 = scmp.ge.s32.totalorder %s40_s21, 2  ;;  %p384_p1 = scmp.ne.s32.totalorder %s2182_s15, %s2178_s30 }
   0xb   : > { %p385_p2 = scmp.eq.s32.totalorder %s1829_s19, 1  ;;  %p390_p3 = scmp.ne.s32.totalorder %s2178_s30, %s2174_s29 }
   0xc   : > { %s2728_s21 = smov (%p42_p0, %s40_s21), 0  ;;  %p391_p5 = scmp.eq.s32.totalorder %s1830_s20, 1 }
   0xd   : > { %2715 = sst [smem:[#allocation7_spill]] %s2728_s21  ;;  %p2324_p4 = por %p385_p2, %p384_p1 }
   0xe   : > { %s369_s24 = ssub.s32 %s2190_s17, %s2728_s21  ;;  %p1833_p6 = scmp.ge.s32.totalorder %s2194_s18, 1 }
   0xf   : > { %p372_p7 = scmp.eq.s32.totalorder %s369_s24, 0  ;;  %p2331_p8 = por %p391_p5, %p390_p3 }
  0x10   : > { %p469_p9 = scmp.lt.s32.totalorder %s2194_s18, 3 }
  0x11   : > { %s2337_s26 = scalar_select %p372_p7, %s2182_s15, %s374_s22  }
  0x12   : > { %p470_p10 = pnand %p1833_p6, %p469_p9 }
  0x13   : > { %2718 = sst [smem:[#allocation8_spill]] %s2337_s26  ;;  %p539_p11 = scmp.lt.s32.totalorder (!%p470_p10), %s2186_s16, 1  ;;  %v573_v0 = vlaneseq (!%p470_p10)  ;;  %v2196_v1 = vmov (!%p470_p10), 0   ;;  %v2060_v2 = vld [vmem:[%s2700_s7] sm:$0xff] (!%p470_p10)   ;;  %v2061_v4 = vld [vmem:[%s2700_s7 + $0x8] sm:$0xff] (!%p470_p10)   ;;  %v2062_v10 = vld [vmem:[%s2700_s7 + $0x10] sm:$0xff] (!%p470_p10)  }
  0x14   : > { %473 = sbr.rel (%p470_p10) target bundleno = 971 (0x3cb), region = 72  ;;  %2059 = vset.pattern.permute.xlu0 (!%p470_p10), %v2196_v1  ;;  %1928 = vmatprep.subr.bf16.mxu1 (!%p470_p10), %v2060_v2  ;;  %s2719_s0 = sld [smem:[#allocation9_spill]] (!%p470_p10)  ;;  %v2063_v19 = vld [vmem:[%s2700_s7 + $0x18] sm:$0xff] (!%p470_p10)   ;;  %v2064_v26 = vld [vmem:[%s2700_s7 + $0x20] sm:$0xff] (!%p470_p10)   ;;  %v2065_v30 = vld [vmem:[%s2700_s7 + $0x28] sm:$0xff] (!%p470_p10)   ;;  %v2197_v32 = vmov (!%p470_p10), 0.0  }
  0x15   : > { %v2347_v3 = vshrl.u32 (!%p470_p10), %v573_v0, 7  ;;  %1929 = vmatpush3.bf16.msra.mxu1 (!%p470_p10), %v2060_v2  ;;  %s2720_s1 = sld [smem:[#allocation10_spill]] (!%p470_p10)  ;;  %v2068_v31 = vld [vmem:[%s2704_s11] sm:$0xff] (!%p470_p10)   ;;  %1908 = vmatprep.subr.bf16.mxu0 (!%p470_p10), %v2197_v32  ;;  %v2066_v33 = vld [vmem:[%s2700_s7 + $0x30] sm:$0xff] (!%p470_p10)   ;;  %v2067_v34 = vld [vmem:[%s2700_s7 + $0x38] sm:$0xff] (!%p470_p10)   ;;  %vm2198_vm1 = vmmov (!%p470_p10), 0  }
  0x16   : > { %1930 = vmatprep.subr.bf16.mxu1 (!%p470_p10), %v2061_v4  ;;  %1909 = vmatpush3.bf16.msra.mxu0 (!%p470_p10), %v2068_v31  ;;  %v2069_v35 = vld [vmem:[%s2704_s11 + $0x8] sm:$0xff] (!%p470_p10)   ;;  %v2070_v36 = vld [vmem:[%s2704_s11 + $0x10] sm:$0xff] (!%p470_p10)   ;;  %v2071_v37 = vld [vmem:[%s2704_s11 + $0x18] sm:$0xff] (!%p470_p10)   ;;  %vm805_vm2 = vcmask (!%p470_p10), 1041409   ;;  %vm807_vm3 = vcmask (!%p470_p10), 1042434   ;;  %vm809_vm4 = vcmask (!%p470_p10), 1043459  }
  0x17   : > { %v589_v5 = vsub.s32 (!%p470_p10), 2, %v2347_v3  ;;  %v575_v6 = vsub.s32 (!%p470_p10), 0, %v2347_v3  ;;  %v596_v7 = vsub.s32 (!%p470_p10), 3, %v2347_v3  ;;  %v582_v8 = vsub.s32 (!%p470_p10), 1, %v2347_v3  ;;  %1910 = vmatprep.subr.bf16.mxu0 (!%p470_p10), %v2197_v32  ;;  %v2072_v38 = vld [vmem:[%s2704_s11 + $0x20] sm:$0xff] (!%p470_p10)   ;;  %v2073_v39 = vld [vmem:[%s2704_s11 + $0x28] sm:$0xff] (!%p470_p10)   ;;  %1924 = vmatprep.mubr.msk.bf16.mxu0 (!%p470_p10), %vm2198_vm1, %v2197_v32 }
  0x18   : > { %v603_v14 = vsub.s32 (!%p470_p10), 4, %v2347_v3  ;;  %v610_v17 = vsub.s32 (!%p470_p10), 5, %v2347_v3  ;;  %v617_v20 = vsub.s32 (!%p470_p10), 6, %v2347_v3  ;;  %v624_v21 = vsub.s32 (!%p470_p10), 7, %v2347_v3  ;;  %v2074_v40 = vld [vmem:[%s2704_s11 + $0x30] sm:$0xff] (!%p470_p10)   ;;  %v2075_v41 = vld [vmem:[%s2704_s11 + $0x38] sm:$0xff] (!%p470_p10)  }
  0x19   : > { %1931 = vmatpush3.bf16.msra.mxu1 (!%p470_p10), %v2061_v4  ;;  %v1840_v42 = vld [vmem:[%s2697_s4] ss:$0 sm:$0xff] (!%p470_p10)  ;;  %vm811_vm5 = vcmask (!%p470_p10), 1044484   ;;  %vm813_vm6 = vcmask (!%p470_p10), 1045509   ;;  %vm815_vm7 = vcmask (!%p470_p10), 1046534   ;;  %vm817_vm8 = vcmask (!%p470_p10), 1047559  }
  0x1a   : > { %1932 = vmatprep.subr.bf16.mxu1 (!%p470_p10), %v2062_v10  ;;  %1911 = vmatpush3.bf16.msra.mxu0 (!%p470_p10), %v2069_v35  ;;  %v1841_v47 = vld [vmem:[%s2698_s5] ss:$0 sm:$0xff] (!%p470_p10)  ;;  %s2199_s22 = smov (!%p470_p10), 120   ;;  %s2201_s27 = smov (!%p470_p10), 104   ;;  %vm1643_vm11 = vcmask (!%p470_p10), 64512   ;;  %vm917_vm12 = vcmask (!%p470_p10), 261120  }
  0x1b   : > { %s2345_s19 = scalar_select %p539_p11, %s2186_s16, 1  ;;  %1912 = vmatprep.subr.bf16.mxu0 %v2197_v32 }
  0x1c   : > { %s2202_s26 = smov 96   ;;  %s2204_s28 = smov 80  }
  0x1d   : > { %s2353_s24 = sshll.u32 %s2345_s19, 3  ;;  %s548_s17 = scalar_lea.vmem %s2720_s1, %s2345_s19  ;;  %1933 = vmatpush3.bf16.msra.mxu1 %v2062_v10 }
  0x1e   : > { %s545_s21 = scalar_lea.vmem %s2719_s0, %s2353_s24  ;;  %v1619_v13 = vld [vmem:[%s548_s17] sm:$0x1]  ;;  %s552_s15 = scalar_lea.vmem %s2695_s2, %s2353_s24  ;;  %1934 = vmatprep.subr.bf16.mxu1 %v2063_v19  ;;  %1913 = vmatpush3.bf16.msra.mxu0 %v2070_v36 }
  0x1f   : > { %v569_v9 = vld [vmem:[%s545_s21] sm:$0xff]  ;;  %vm1620_vm0 = vcmp.gt.f32.partialorder %v1619_v13, 0.5  ;;  %1914 = vmatprep.subr.bf16.mxu0 %v2197_v32  ;;  %s2200_s21 = smov 112   ;;  %s2205_s17 = smov 72  }
  0x20   : > { %v590_v11 = vrot.slane %v569_v9, %v589_v5  ;;  %v576_v12 = vrot.slane %v569_v9, %v575_v6  ;;  %v597_v15 = vrot.slane %v569_v9, %v596_v7  ;;  %v583_v16 = vrot.slane %v569_v9, %v582_v8  ;;  %v695_v25 = vld [vmem:[%s552_s15] sm:$0xff]  ;;  %s2203_s15 = smov 88   ;;  %s559_s1 = scalar_lea.vmem %s2696_s3, %s2353_s24 }
  0x21   : > { %v1621_v18 = vsel %vm1620_vm0, 1, %v2196_v1  ;;  %v604_v23 = vrot.slane %v569_v9, %v603_v14  ;;  %v611_v24 = vrot.slane %v569_v9, %v610_v17  ;;  %1935 = vmatpush3.bf16.msra.mxu1 %v2063_v19  ;;  %v618_v27 = vrot.slane %v569_v9, %v617_v20  ;;  %s1874_s0 = sshll.u32 %s2345_s19, 7 }
  0x22   : > { %592 = vbcast.lane.b32.xlu1 %v590_v11, 256  ;;  %578 = vbcast.lane.b32.xlu0 %v576_v12, 256  ;;  %v2382_v22 = vrot.slane %v1621_v18, %v575_v6  ;;  %v625_v28 = vrot.slane %v569_v9, %v624_v21  ;;  %v696_v29 = vsub.f32 1.0, %v695_v25  ;;  %s2546_s24 = scalar_lea.vmem %s2706_s13, %s1874_s0 }
  0x23   : > { %1936 = vmatprep.subr.bf16.mxu1 %v2064_v26  ;;  %1915 = vmatpush3.bf16.msra.mxu0 %v2071_v37 }
  0x24   : > { %1916 = vmatprep.subr.bf16.mxu0 %v2197_v32  ;;  %vm1626_vm10 = vcmp.eq.s32.totalorder %v2382_v22, 1  ;;  %v1843_v22 = vld [vmem:[%s2705_s12] ss:$0 sm:$0xff] }
  0x25   : > { %1937 = vmatpush3.bf16.msra.mxu1 %v2064_v26 }
  0x26   : > { %599 = vbcast.lane.b32.xlu1 %v597_v15, 256  ;;  %585 = vbcast.lane.b32.xlu0 %v583_v16, 256 }
  0x27   : > { %1938 = vmatprep.subr.bf16.mxu1 %v2065_v30  ;;  %1917 = vmatpush3.bf16.msra.mxu0 %v2072_v38 }
  0x28   : > { %1918 = vmatprep.subr.bf16.mxu0 %v2197_v32 }
  0x29   : > { %1939 = vmatpush3.bf16.msra.mxu1 %v2065_v30 }
  0x2a   : > { %606 = vbcast.lane.b32.xlu0 %v604_v23, 256  ;;  %613 = vbcast.lane.b32.xlu1 %v611_v24, 256  ;;  %v1842_v24 = vld [vmem:[%s2699_s6] ss:$0 sm:$0xff] }
  0x2b   : > { %1940 = vmatprep.subr.bf16.mxu1 %v2066_v33  ;;  %1919 = vmatpush3.bf16.msra.mxu0 %v2073_v39 }
  0x2c   : > { %1920 = vmatprep.subr.bf16.mxu0 %v2197_v32 }
  0x2d   : > { %1941 = vmatpush3.bf16.msra.mxu1 %v2066_v33 }
  0x2e   : > { %620 = vbcast.lane.b32.xlu0 %v618_v27, 256  ;;  %627 = vbcast.lane.b32.xlu1 %v625_v28, 256 }
  0x2f   : > { %1942 = vmatprep.subr.bf16.mxu1 %v2067_v34  ;;  %1921 = vmatpush3.bf16.msra.mxu0 %v2074_v40 }
  0x30   : > { %1922 = vmatprep.subr.bf16.mxu0 %v2197_v32 }
  0x31   : > { %1943 = vmatpush3.bf16.msra.mxu1 %v2067_v34 }
  0x32   : > { %699 = vperm.xlu0 %2059, %v696_v29  }
  0x33   : > { %1923 = vmatpush3.bf16.msra.mxu0 %v2075_v41 }
  0x94   : > { %v593_v43 = vpop.permute.xlu1 %592  ;;  %v579_v44 = vpop.permute.xlu0 %578 }
  0x95   : > { %v637_v45 = vsub.f32 %v593_v43, %v1840_v42  ;;  %v635_v46 = vsub.f32 %v579_v44, %v1840_v42 }
  0x97   : > { %v645_v48 = vmul.f32 %v637_v45, %v637_v45  ;;  %v643_v49 = vmul.f32 %v635_v46, %v635_v46 }
  0x98   : > { %v600_v50 = vpop.permute.xlu1 %599  ;;  %v586_v51 = vpop.permute.xlu0 %585 }
  0x99   : > { %v659_v52 = vmul.f32 %v1841_v47, %v645_v48  ;;  %v657_v53 = vmul.f32 %v1841_v47, %v643_v49  ;;  %v638_v54 = vsub.f32 %v600_v50, %v1840_v42  ;;  %v636_v55 = vsub.f32 %v586_v51, %v1840_v42 }
  0x9b   : > { %v669_v56 = vmul.f32 1.442695, %v659_v52  ;;  %v646_v57 = vmul.f32 %v638_v54, %v638_v54  ;;  %v644_v58 = vmul.f32 %v636_v55, %v636_v55  ;;  %v665_v59 = vmul.f32 1.442695, %v657_v53 }
  0x9c   : > { %v614_v60 = vpop.permute.xlu1 %613  ;;  %v607_v61 = vpop.permute.xlu0 %606 }
  0x9d   : > { %v660_v62 = vmul.f32 %v1841_v47, %v646_v57  ;;  %v658_v63 = vmul.f32 %v1841_v47, %v644_v58  ;;  %v640_v0 = vsub.f32 %v614_v60, %v1840_v42  ;;  %v639_v2 = vsub.f32 %v607_v61, %v1840_v42 }
  0x9e   : > { %2084 = vpow2.f32 %v669_v56 }
  0x9f   : > { %v671_v4 = vmul.f32 1.442695, %v660_v62  ;;  %v667_v5 = vmul.f32 1.442695, %v658_v63  ;;  %v648_v6 = vmul.f32 %v640_v0, %v640_v0  ;;  %2086 = vpow2.f32 %v665_v59 }
  0xa0   : > { %v647_v7 = vmul.f32 %v639_v2, %v639_v2  ;;  %v628_v8 = vpop.permute.xlu1 %627  ;;  %v621_v9 = vpop.permute.xlu0 %620 }
  0xa1   : > { %2088 = vpow2.f32 %v671_v4  ;;  %v662_v10 = vmul.f32 %v1841_v47, %v648_v6  ;;  %v642_v11 = vsub.f32 %v628_v8, %v1840_v42  ;;  %v641_v12 = vsub.f32 %v621_v9, %v1840_v42 }
  0xa2   : > { %2090 = vpow2.f32 %v667_v5  ;;  %v661_v13 = vmul.f32 %v1841_v47, %v647_v7 }
  0xa3   : > { %v675_v14 = vmul.f32 1.442695, %v662_v10  ;;  %v650_v15 = vmul.f32 %v642_v11, %v642_v11  ;;  %v649_v16 = vmul.f32 %v641_v12, %v641_v12 }
  0xa4   : > { %v673_v17 = vmul.f32 1.442695, %v661_v13 }
  0xa5   : > { %2092 = vpow2.f32 %v675_v14  ;;  %v664_v18 = vmul.f32 %v1841_v47, %v650_v15  ;;  %v663_v19 = vmul.f32 %v1841_v47, %v649_v16 }
  0xa6   : > { %2094 = vpow2.f32 %v673_v17 }
  0xa7   : > { %v679_v20 = vmul.f32 1.442695, %v664_v18  ;;  %v677_v21 = vmul.f32 1.442695, %v663_v19 }
  0xa8   : > { %v2085_v23 = vpop.eup %2084 }
  0xa9   : > { %2096 = vpow2.f32 %v679_v20  ;;  %v2087_v25 = vpop.eup %2086  ;;  %v689_v28 = vmul.f32 %v2085_v23, %v1842_v24 }
  0xaa   : > { %2098 = vpow2.f32 %v677_v21  ;;  %v687_v30 = vmul.f32 %v2087_v25, %v1842_v24 }
  0xab   : > { %v2089_v26 = vpop.eup %2088 }
  0xac   : > { %v2091_v27 = vpop.eup %2090  ;;  %v690_v29 = vmul.f32 %v2089_v26, %v1842_v24 }
  0xad   : > { %v688_v31 = vmul.f32 %v2091_v27, %v1842_v24 }
  0xae   : > { %v920_v32 = vpack.c.bf16 %v690_v29, %v689_v28 }
  0xaf   : > { %v2093_v33 = vpop.eup %2092  ;;  %v919_v34 = vpack.c.bf16 %v688_v31, %v687_v30 }
  0xb0   : > { %v2095_v35 = vpop.eup %2094  ;;  %v692_v36 = vmul.f32 %v2093_v33, %v1842_v24 }
  0xb1   : > { %1944 = vmatprep.mubr.bf16.mxu1 %v919_v34  ;;  %v700_v37 = vpop.permute.xlu0 %699  ;;  %v691_v38 = vmul.f32 %v2095_v35, %v1842_v24 }
  0xb2   : > { %1945 = vmatmul.mubr.bf16.vlgmr.msra.gmra.mrb[0].mxu1 %v920_v32  ;;  %v702_v39 = vmul.f32 %v700_v37, %v687_v30  ;;  %v703_v40 = vmul.f32 %v700_v37, %v688_v31  ;;  %v704_v41 = vmul.f32 %v700_v37, %v689_v28  ;;  %v705_v42 = vmul.f32 %v700_v37, %v690_v29 }
  0xb3   : > { %v2097_v43 = vpop.eup %2096  ;;  %v706_v44 = vmul.f32 %v700_v37, %v691_v38  ;;  %v707_v45 = vmul.f32 %v700_v37, %v692_v36  ;;  %v921_v46 = vpack.c.bf16 %v692_v36, %v691_v38 }
  0xb4   : > { %v2099_v47 = vpop.eup %2098  ;;  %v710_v48 = vrot.slane %v702_v39, 4  ;;  %v716_v49 = vrot.slane %v703_v40, 4  ;;  %v722_v50 = vrot.slane %v704_v41, 4  ;;  %v728_v51 = vrot.slane %v705_v42, 4 }
  0xb5   : > { %v734_v52 = vrot.slane %v706_v44, 4  ;;  %v740_v53 = vrot.slane %v707_v45, 4  ;;  %1948 = vmatprep.mubr.bf16.mxu1 %v921_v46  ;;  %v693_v54 = vmul.f32 %v2099_v47, %v1842_v24  ;;  %v694_v55 = vmul.f32 %v2097_v43, %v1842_v24 }
  0xb6   : > { %v711_v56 = vadd.f32 %v710_v48, %v702_v39  ;;  %v717_v57 = vadd.f32 %v716_v49, %v703_v40  ;;  %v723_v58 = vadd.f32 %v722_v50, %v704_v41  ;;  %v729_v59 = vadd.f32 %v728_v51, %v705_v42 }
  0xb7   : > { %v735_v60 = vadd.f32 %v734_v52, %v706_v44  ;;  %v741_v61 = vadd.f32 %v740_v53, %v707_v45  ;;  %v708_v62 = vmul.f32 %v700_v37, %v693_v54  ;;  %v709_v63 = vmul.f32 %v700_v37, %v694_v55 }
  0xb8   : > { %v712_v0 = vrot.slane %v711_v56, 2  ;;  %v718_v2 = vrot.slane %v717_v57, 2  ;;  %v724_v4 = vrot.slane %v723_v58, 2  ;;  %v922_v5 = vpack.c.bf16 %v694_v55, %v693_v54 }
  0xb9   : > { %v736_v6 = vrot.slane %v735_v60, 2  ;;  %v742_v7 = vrot.slane %v741_v61, 2  ;;  %v746_v8 = vrot.slane %v708_v62, 4  ;;  %v752_v9 = vrot.slane %v709_v63, 4 }
  0xba   : > { %v713_v10 = vadd.f32 %v712_v0, %v711_v56  ;;  %v719_v11 = vadd.f32 %v718_v2, %v717_v57  ;;  %1949 = vmatmul.mubr.bf16.gmra.mrb[4].mxu1 %v922_v5  ;;  %v725_v12 = vadd.f32 %v724_v4, %v723_v58  ;;  %v730_v13 = vrot.slane %v729_v59, 2  ;;  %v2076_v0 = vld [vmem:[%s2702_s9] sm:$0xff]   ;;  %v2077_v2 = vld [vmem:[%s2702_s9 + $0x8] sm:$0xff]   ;;  %v2078_v4 = vld [vmem:[%s2702_s9 + $0x10] sm:$0xff]  }
  0xbb   : > { %v737_v14 = vadd.f32 %v736_v6, %v735_v60  ;;  %v743_v15 = vadd.f32 %v742_v7, %v741_v61  ;;  %v747_v16 = vadd.f32 %v746_v8, %v708_v62  ;;  %v753_v17 = vadd.f32 %v752_v9, %v709_v63  ;;  %1952 = vmatprep.subr.bf16.mxu0 %v2076_v0  ;;  %v2079_v5 = vld [vmem:[%s2702_s9 + $0x18] sm:$0xff]   ;;  %v2080_v6 = vld [vmem:[%s2702_s9 + $0x20] sm:$0xff]   ;;  %v2081_v7 = vld [vmem:[%s2702_s9 + $0x28] sm:$0xff]  }
  0xbc   : > { %v714_v18 = vrot.slane %v713_v10, 1  ;;  %v720_v19 = vrot.slane %v719_v11, 1  ;;  %v726_v20 = vrot.slane %v725_v12, 1  ;;  %v731_v21 = vadd.f32 %v730_v13, %v729_v59  ;;  %1976 = vmatprep.subr.bf16.mxu1 %v2076_v0  ;;  %v2082_v8 = vld [vmem:[%s2702_s9 + $0x30] sm:$0xff]   ;;  %v2083_v9 = vld [vmem:[%s2702_s9 + $0x38] sm:$0xff]  }
  0xbd   : > { %v738_v23 = vrot.slane %v737_v14, 1  ;;  %v744_v24 = vrot.slane %v743_v15, 1  ;;  %v748_v25 = vrot.slane %v747_v16, 2  ;;  %v754_v26 = vrot.slane %v753_v17, 2  ;;  %1984 = vmatpush3.bf16.msra.mxu1 %v2076_v0 }
  0xbe   : > { %v715_v27 = vadd.f32 %v714_v18, %v713_v10  ;;  %v721_v28 = vadd.f32 %v720_v19, %v719_v11  ;;  %v727_v29 = vadd.f32 %v726_v20, %v725_v12  ;;  %v732_v30 = vrot.slane %v731_v21, 1  ;;  %1977 = vmatprep.subr.bf16.mxu1 %v2077_v2  ;;  %v1852_v10 = vld [vmem:[%s2701_s8] ss:$0 sm:$0xff] }
  0xbf   : > { %v739_v31 = vadd.f32 %v738_v23, %v737_v14  ;;  %v745_v32 = vadd.f32 %v744_v24, %v743_v15  ;;  %v749_v33 = vadd.f32 %v748_v25, %v747_v16  ;;  %v755_v34 = vadd.f32 %v754_v26, %v753_v17 }
  0xc0   : > { %v733_v35 = vadd.f32 %v732_v30, %v731_v21  ;;  %v758_v36 = vpack.c.bf16 %v715_v27, %v715_v27  ;;  %v759_v37 = vpack.c.bf16 %v721_v28, %v721_v28  ;;  %v760_v38 = vpack.c.bf16 %v727_v29, %v727_v29 }
  0xc1   : > { %v762_v39 = vpack.c.bf16 %v739_v31, %v739_v31  ;;  %v750_v40 = vrot.slane %v749_v33, 1  ;;  %v756_v41 = vrot.slane %v755_v34, 1  ;;  %v763_v42 = vpack.c.bf16 %v745_v32, %v745_v32  ;;  %1985 = vmatpush3.bf16.msra.mxu1 %v2077_v2 }
  0xc2   : > { %v761_v43 = vpack.c.bf16 %v733_v35, %v733_v35  ;;  %v797_v44 = vunpack.c.l.b16 %v758_v36  ;;  %v798_v45 = vunpack.c.l.b16 %v759_v37  ;;  %v799_v46 = vunpack.c.l.b16 %v760_v38  ;;  %1978 = vmatprep.subr.bf16.mxu1 %v2078_v4 }
  0xc3   : > { %v801_v47 = vunpack.c.l.b16 %v762_v39  ;;  %v751_v48 = vadd.f32 %v750_v40, %v749_v33  ;;  %v757_v49 = vadd.f32 %v756_v41, %v755_v34  ;;  %v802_v51 = vunpack.c.l.b16 %v763_v42 }
  0xc4   : > { %v800_v50 = vunpack.c.l.b16 %v761_v43  ;;  %v806_v52 = vsel %vm805_vm2, %v798_v45, %v797_v44 }
  0xc5   : > { %v764_v53 = vpack.c.bf16 %v751_v48, %v751_v48  ;;  %v765_v54 = vpack.c.bf16 %v757_v49, %v757_v49  ;;  %v808_v55 = vsel %vm807_vm3, %v799_v46, %v806_v52  ;;  %1986 = vmatpush3.bf16.msra.mxu1 %v2078_v4 }
  0xc6   : > { %v810_v56 = vsel %vm809_vm4, %v800_v50, %v808_v55  ;;  %1979 = vmatprep.subr.bf16.mxu1 %v2079_v5 }
  0xc7   : > { %v803_v57 = vunpack.c.l.b16 %v764_v53  ;;  %v804_v58 = vunpack.c.l.b16 %v765_v54  ;;  %v812_v59 = vsel %vm811_vm5, %v801_v47, %v810_v56 }
  0xc8   : > { %v814_v60 = vsel %vm813_vm6, %v802_v51, %v812_v59 }
  0xc9   : > { %v816_v61 = vsel %vm815_vm7, %v803_v57, %v814_v60  ;;  %1987 = vmatpush3.bf16.msra.mxu1 %v2079_v5 }
  0xca   : > { %v818_v62 = vsel %vm817_vm8, %v804_v58, %v816_v61  ;;  %1980 = vmatprep.subr.bf16.mxu1 %v2080_v6 }
  0xcb   : > { %v819_v63 = vpack.c.b16 %v818_v62, %v818_v62 }
  0xcd   : > { %1925 = vmatmul.mubr.bf16.vlgmr.msra.gmra.mrb[0].mxu0 %v819_v63  ;;  %1988 = vmatpush3.bf16.msra.mxu1 %v2080_v6 }
  0xce   : > { %1953 = vmatpush3.bf16.msra.mxu0 %v2076_v0  ;;  %1981 = vmatprep.subr.bf16.mxu1 %v2081_v7 }
  0xcf   : > { %1954 = vmatprep.subr.bf16.mxu0 %v2077_v2 }
  0xd1   : > { %1989 = vmatpush3.bf16.msra.mxu1 %v2081_v7 }
  0xd2   : > { %1955 = vmatpush3.bf16.msra.mxu0 %v2077_v2  ;;  %1982 = vmatprep.subr.bf16.mxu1 %v2082_v8 }
  0xd3   : > { %1956 = vmatprep.subr.bf16.mxu0 %v2078_v4 }
  0xd5   : > { %1990 = vmatpush3.bf16.msra.mxu1 %v2082_v8 }
  0xd6   : > { %1957 = vmatpush3.bf16.msra.mxu0 %v2078_v4  ;;  %1983 = vmatprep.subr.bf16.mxu1 %v2083_v9 }
  0xd7   : > { %1958 = vmatprep.subr.bf16.mxu0 %v2079_v5 }
  0xd9   : > { %1991 = vmatpush3.bf16.msra.mxu1 %v2083_v9 }
  0xda   : > { %1959 = vmatpush3.bf16.msra.mxu0 %v2079_v5 }
  0xdb   : > { %1960 = vmatprep.subr.bf16.mxu0 %v2080_v6 }
  0xde   : > { %1961 = vmatpush3.bf16.msra.mxu0 %v2080_v6 }
  0xdf   : > { %1962 = vmatprep.subr.bf16.mxu0 %v2081_v7 }
  0xe2   : > { %1963 = vmatpush3.bf16.msra.mxu0 %v2081_v7 }
  0xe3   : > { %1964 = vmatprep.subr.bf16.mxu0 %v2082_v8 }
  0xe6   : > { %1965 = vmatpush3.bf16.msra.mxu0 %v2082_v8 }
  0xe7   : > { %1966 = vmatprep.subr.bf16.mxu0 %v2083_v9 }
  0xea   : > { %1967 = vmatpush3.bf16.msra.mxu0 %v2083_v9 }
 0x185   : > { %v1946_v11 = vpop.f32.mrb[0].mxu1 }
 0x186   : > { %v2458_v12 = vadd.f32 %v1946_v11, %v1852_v10  ;;  %v1028_v13 = vpop.f32.mrb[1].mxu1 }
 0x187   : > { %v2460_v14 = vadd.f32 %v1852_v10, %v1028_v13  ;;  %v1947_v15 = vpop.f32.mrb[2].mxu1 }
 0x188   : > { %v1069_v16 = vmul.f32 0.044715, %v2458_v12  ;;  %v1040_v17 = vadd.f32 %v1947_v15, %v1852_v10  ;;  %v1031_v18 = vpop.f32.mrb[3].mxu1 }
 0x189   : > { %v1067_v19 = vmul.f32 0.044715, %v2460_v14  ;;  %v2464_v20 = vadd.f32 %v1852_v10, %v1031_v18  ;;  %v1059_v18 = vmul.f32 0.5, %v2460_v14 }
 0x18a   : > { %v1077_v21 = vmul.f32 %v1069_v16, %v2458_v12  ;;  %v1070_v23 = vmul.f32 0.044715, %v1040_v17  ;;  %v1062_v11 = vmul.f32 0.5, %v1040_v17 }
 0x18b   : > { %v1075_v24 = vmul.f32 %v1067_v19, %v2460_v14  ;;  %v1068_v25 = vmul.f32 0.044715, %v2464_v20 }
 0x18c   : > { %v1085_v26 = vmul.f32 %v1077_v21, %v2458_v12  ;;  %v1078_v27 = vmul.f32 %v1070_v23, %v1040_v17  ;;  %v1060_v23 = vmul.f32 0.5, %v2464_v20 }
 0x18d   : > { %v1083_v28 = vmul.f32 %v1075_v24, %v2460_v14  ;;  %v1076_v29 = vmul.f32 %v1068_v25, %v2464_v20  ;;  %v1950_v30 = vpop.f32.mrb[4].mxu1 }
 0x18e   : > { %v1093_v31 = vadd.f32 %v1085_v26, %v2458_v12  ;;  %v1086_v32 = vmul.f32 %v1078_v27, %v1040_v17  ;;  %v2473_v33 = vadd.f32 %v1950_v30, %v1852_v10  ;;  %v1044_v34 = vpop.f32.mrb[5].mxu1 }
 0x18f   : > { %v1084_v35 = vmul.f32 %v1076_v29, %v2464_v20  ;;  %v2476_v36 = vadd.f32 %v1852_v10, %v1044_v34  ;;  %v1951_v37 = vpop.f32.mrb[6].mxu1  ;;  %v1091_v38 = vadd.f32 %v1083_v28, %v2460_v14 }
 0x190   : > { %v1101_v39 = vmul.f32 0.7978846, %v1093_v31  ;;  %v1094_v40 = vadd.f32 %v1086_v32, %v1040_v17  ;;  %v1073_v41 = vmul.f32 0.044715, %v2473_v33  ;;  %v1047_v42 = vpop.f32.mrb[7].mxu1  ;;  %v1056_v44 = vadd.f32 %v1951_v37, %v1852_v10 }
 0x191   : > { %v1071_v43 = vmul.f32 0.044715, %v2476_v36  ;;  %v2481_v45 = vadd.f32 %v1852_v10, %v1047_v42  ;;  %v1092_v46 = vadd.f32 %v1084_v35, %v2464_v20  ;;  %v1099_v49 = vmul.f32 0.7978846, %v1091_v38 }
 0x192   : > { %2100 = vtanh.f32 %v1101_v39  ;;  %v1102_v47 = vmul.f32 0.7978846, %v1094_v40  ;;  %v1081_v48 = vmul.f32 %v1073_v41, %v2473_v33  ;;  %v1074_v51 = vmul.f32 0.044715, %v1056_v44 }
 0x193   : > { %v1079_v50 = vmul.f32 %v1071_v43, %v2476_v36  ;;  %v1072_v52 = vmul.f32 0.044715, %v2481_v45  ;;  %v1100_v54 = vmul.f32 0.7978846, %v1092_v46  ;;  %v1061_v10 = vmul.f32 0.5, %v2458_v12 }
 0x194   : > { %2102 = vtanh.f32 %v1102_v47  ;;  %v1089_v53 = vmul.f32 %v1081_v48, %v2473_v33  ;;  %v1082_v56 = vmul.f32 %v1074_v51, %v1056_v44  ;;  %v1065_v38 = vmul.f32 0.5, %v2473_v33 }
 0x195   : > { %v1087_v55 = vmul.f32 %v1079_v50, %v2476_v36  ;;  %v1080_v57 = vmul.f32 %v1072_v52, %v2481_v45  ;;  %2104 = vtanh.f32 %v1099_v49  ;;  %v1066_v39 = vmul.f32 0.5, %v1056_v44 }
 0x196   : > { %v1097_v58 = vadd.f32 %v1089_v53, %v2473_v33  ;;  %2106 = vtanh.f32 %v1100_v54  ;;  %v1090_v59 = vmul.f32 %v1082_v56, %v1056_v44  ;;  %v1063_v40 = vmul.f32 0.5, %v2476_v36  ;;  %v1861_v33 = vld [vmem:[%s2703_s10] ss:$0 sm:$0xff] }
 0x197   : > { %v1088_v60 = vmul.f32 %v1080_v57, %v2481_v45  ;;  %v1095_v61 = vadd.f32 %v1087_v55, %v2476_v36  ;;  %v1064_v41 = vmul.f32 0.5, %v2481_v45 }
 0x198   : > { %v1105_v62 = vmul.f32 0.7978846, %v1097_v58  ;;  %v1098_v63 = vadd.f32 %v1090_v59, %v1056_v44 }
 0x199   : > { %v1096_v0 = vadd.f32 %v1088_v60, %v2481_v45  ;;  %v1103_v2 = vmul.f32 0.7978846, %v1095_v61 }
 0x19a   : > { %2108 = vtanh.f32 %v1105_v62  ;;  %v1106_v4 = vmul.f32 0.7978846, %v1098_v63 }
 0x19b   : > { %v1104_v5 = vmul.f32 0.7978846, %v1096_v0  ;;  %2110 = vtanh.f32 %v1103_v2 }
 0x19c   : > { %v2101_v6 = vpop.eup %2100  ;;  %2112 = vtanh.f32 %v1106_v4  ;;  %v909_v4 = vld [vmem:[%s559_s1] sm:$0xff] }
 0x19d   : > { %v1117_v7 = vadd.f32 1.0, %v2101_v6  ;;  %2114 = vtanh.f32 %v1104_v5  ;;  %vm910_vm9 = vcmp.gt.f32.partialorder %v909_v4, 0.5 }
 0x19e   : > { %v2103_v8 = vpop.eup %2102  ;;  %v911_v5 = vsel %vm910_vm9, 1, %v2196_v1 }
 0x19f   : > { %v2105_v9 = vpop.eup %2104  ;;  %v1118_v13 = vadd.f32 1.0, %v2103_v8  ;;  %v1125_v25 = vmul.f32 %v1117_v7, %v1061_v10 }
 0x1a0   : > { %v2107_v15 = vpop.eup %2106  ;;  %v2495_v16 = vpop.f32.mrb[0].mxu0  ;;  %v1115_v19 = vadd.f32 1.0, %v2105_v9  ;;  %v2206_v9 = vmov 1983009808  }
 0x1a1   : > { %v1926_v21 = vpop.f32.mrb[1].mxu0  ;;  %v1116_v24 = vadd.f32 1.0, %v2107_v15  ;;  %v1126_v26 = vmul.f32 %v1118_v13, %v1062_v11  ;;  %v1350_v10 = vunpack.c.l.s4 %v2206_v9 }
 0x1a2   : > { %v906_v27 = vpop.f32.mrb[2].mxu0  ;;  %v1123_v29 = vmul.f32 %v1115_v19, %v1059_v18  ;;  %v2207_v18 = vmov 1934713408  }
 0x1a3   : > { %v1927_v28 = vpop.f32.mrb[3].mxu0  ;;  %v1124_v30 = vmul.f32 %v1116_v24, %v1060_v23  ;;  %v1132_v31 = vpack.c.bf16 %v1126_v26, %v1125_v25  ;;  %v1351_v13 = vunpack.c.0.s8 %v1350_v10  ;;  %v1414_v19 = vunpack.c.l.s4 %v2207_v18 }
 0x1a4   : > { %v2109_v12 = vpop.eup %2108 }
 0x1a5   : > { %v2111_v17 = vpop.eup %2110  ;;  %v1131_v32 = vpack.c.bf16 %v1124_v30, %v1123_v29  ;;  %v1121_v34 = vadd.f32 1.0, %v2109_v12  ;;  %v2520_v23 = vsub.s32 %v1351_v13, %v2347_v3  ;;  %v1415_v27 = vunpack.c.0.s8 %v1414_v19 }
 0x1a6   : > { %v2113_v35 = vpop.eup %2112  ;;  %v1119_v37 = vadd.f32 1.0, %v2111_v17 }
 0x1a7   : > { %1968 = vmatprep.mubr.bf16.mxu0 %v1131_v32  ;;  %v2115_v14 = vpop.eup %2114  ;;  %v1122_v20 = vadd.f32 1.0, %v2113_v35  ;;  %v1129_v43 = vmul.f32 %v1121_v34, %v1065_v38  ;;  %v2526_v35 = vsub.s32 %v1415_v27, %v2347_v3 }
 0x1a8   : > { %1969 = vmatmul.mubr.bf16.vlgmr.msra.gmra.mrb[4].mxu0 %v1132_v31  ;;  %v1120_v42 = vadd.f32 1.0, %v2115_v14  ;;  %v1127_v47 = vmul.f32 %v1119_v37, %v1063_v40 }
 0x1a9   : > { %v1130_v46 = vmul.f32 %v1122_v20, %v1066_v39 }
 0x1aa   : > { %v1128_v48 = vmul.f32 %v1120_v42, %v1064_v41 }
 0x1ab   : > { %v1134_v49 = vpack.c.bf16 %v1130_v46, %v1129_v43 }
 0x1ac   : > { %v1133_v50 = vpack.c.bf16 %v1128_v48, %v1127_v47 }
 0x1ae   : > { %1972 = vmatprep.mubr.bf16.mxu1 %v1133_v50 }
 0x1af   : > { %1973 = vmatmul.mubr.bf16.vlgmr.msra.gmra.mrb[8].mxu1 %v1134_v49 }
 0x27b   : > { %v1970_v44 = vpop.f32.mrb[4].mxu0 }
 0x27c   : > { %v1240_v51 = vpop.f32.mrb[5].mxu0  ;;  %v1249_v56 = vadd.f32 %v1970_v44, %v1861_v33 }
 0x27d   : > { %v1241_v52 = vadd.f32 %v1861_v33, %v1240_v51  ;;  %v1971_v53 = vpop.f32.mrb[6].mxu0 }
 0x27e   : > { %v1243_v36 = vpop.f32.mrb[7].mxu0  ;;  %v1252_v59 = vadd.f32 %v1971_v53, %v1861_v33 }
 0x27f   : > { %1271 = vxpose.xlu1.b32.start [1/8] (short) (narrow) %v1241_v52, 16  ;;  %v1244_v45 = vadd.f32 %v1861_v33, %v1243_v36 }
 0x282   : > { %v1974_v54 = vpop.f32.mrb[8].mxu1 }
 0x283   : > { %1272 = vxpose.xlu1.b32.cont [2/8] (short) (narrow) %v1244_v45, 16  ;;  %v1256_v55 = vpop.f32.mrb[9].mxu1  ;;  %v1265_v62 = vadd.f32 %v1974_v54, %v1861_v33 }
 0x284   : > { %v1975_v57 = vpop.f32.mrb[10].mxu1  ;;  %v1257_v60 = vadd.f32 %v1861_v33, %v1256_v55 }
 0x285   : > { %v1259_v58 = vpop.f32.mrb[11].mxu1  ;;  %v1268_v63 = vadd.f32 %v1975_v57, %v1861_v33 }
 0x286   : > { %v1260_v61 = vadd.f32 %v1861_v33, %v1259_v58 }
 0x287   : > { %1273 = vxpose.xlu1.b32.cont [3/8] (short) (narrow) %v1249_v56, 16 }
 0x28b   : > { %1274 = vxpose.xlu1.b32.cont [4/8] (short) (narrow) %v1252_v59, 16 }
 0x28f   : > { %1275 = vxpose.xlu1.b32.cont [5/8] (short) (narrow) %v1257_v60, 16 }
 0x293   : > { %1276 = vxpose.xlu1.b32.cont [6/8] (short) (narrow) %v1260_v61, 16 }
 0x297   : > { %1277 = vxpose.xlu1.b32.cont [7/8] (short) (narrow) %v1265_v62, 16 }
 0x29b   : > { %1278 = vxpose.xlu1.b32.end [8/8] (short) (narrow) %v1268_v63, 16 }
 0x2ff   : > { %v1287_v0 = vpop.trf.xlu1 }
 0x300   : > { %1305 = vrot.lane.b32.xlu0 %v1287_v0, %s2199_s22 }
 0x303   : > { %v2505_v2 = vpop.trf.xlu1 }
 0x304   : > { %1311 = vrot.lane.b32.xlu0 %v1287_v0, %s2200_s21 }
 0x308   : > { %1317 = vrot.lane.b32.xlu0 %v1287_v0, %s2201_s27 }
 0x30c   : > { %1323 = vrot.lane.b32.xlu0 %v1287_v0, %s2202_s26 }
 0x310   : > { %1329 = vrot.lane.b32.xlu0 %v1287_v0, %s2203_s15 }
 0x314   : > { %1335 = vrot.lane.b32.xlu0 %v1287_v0, %s2204_s28 }
 0x318   : > { %1341 = vrot.lane.b32.xlu0 %v1287_v0, %s2205_s17 }
 0x31c   : > { %1307 = vrot.lane.b32.xlu0 %v2505_v2, %s2199_s22  ;;  %s536_s22 = sand.u32 1, %s2178_s30  }
 0x320   : > { %1313 = vrot.lane.b32.xlu0 %v2505_v2, %s2200_s21  ;;  %s2601_s21 = sshll.u32 %s536_s22, 3 }
 0x324   : > { %1319 = vrot.lane.b32.xlu0 %v2505_v2, %s2201_s27 }
 0x328   : > { %1325 = vrot.lane.b32.xlu0 %v2505_v2, %s2202_s26 }
 0x32c   : > { %1331 = vrot.lane.b32.xlu0 %v2505_v2, %s2203_s15  ;;  %s1871_s15 = sshll.u32 %s2186_s16, 7  ;;  %s1669_s16 = scalar_lea.sflag [#allocation3], %s536_s22 }
 0x32d   : > { %s2644_s1 = scalar_lea.hbm %s2707_s14, %s1871_s15 }
 0x330   : > { %1337 = vrot.lane.b32.xlu0 %v2505_v2, %s2204_s28  ;;  %s538_s28 = scalar_lea.vmem [#allocation2], %s2601_s21 }
 0x334   : > { %1343 = vrot.lane.b32.xlu0 %v2505_v2, %s2205_s17  ;;  %s1686_s17 = sshll.u32 %s538_s28, 4  ;;  %s2646_s17 = int_to_ptr.vmem [resolvable:$true] %s1686_s17 }
 0x335   : > { %s2116_s19 = scalar_lea.vmem %s2646_s17, 128 }
 0x336   : > { %p2117_p12 = scmp.ne.s32.totalorder %s2646_s17, %s2116_s19 }
 0x338   : > { %913 = vperm.xlu0 %2059, %v911_v5   ;;  %p2118_p13 = pnand %p2117_p12, %p2324_p4 }
 0x33a   : > { %p2119_p0 = pneg %p2118_p13 }
 0x372   : > { %v1306_v6 = vpop.permute.xlu0 %1305 }
 0x376   : > { %v1312_v7 = vpop.permute.xlu0 %1311 }
 0x377   : > { %v1347_v24 = vcombine.low %v1287_v0, %v1312_v7  ;;  %v1348_v1 = vcombine.high %v1287_v0, %v1312_v7 }
 0x379   : > { %v1355_v31 = vrot.slane %v1347_v24, %v2520_v23  ;;  %v1362_v37 = vrot.slane %v1348_v1, %v2520_v23 }
 0x37a   : > { %v1318_v8 = vpop.permute.xlu0 %1317 }
 0x37b   : > { %v1363_v21 = vcombine.low %v1306_v6, %v1318_v8  ;;  %v1364_v25 = vcombine.high %v1306_v6, %v1318_v8 }
 0x37d   : > { %v1371_v28 = vrot.slane %v1363_v21, %v2520_v23  ;;  %v1378_v12 = vrot.slane %v1364_v25, %v2520_v23 }
 0x37e   : > { %v1324_v11 = vpop.permute.xlu0 %1323 }
 0x37f   : > { %v1411_v14 = vcombine.low %v1355_v31, %v1371_v28  ;;  %v1412_v38 = vcombine.high %v1355_v31, %v1371_v28  ;;  %v1427_v42 = vcombine.low %v1362_v37, %v1378_v12  ;;  %v1428_v43 = vcombine.high %v1362_v37, %v1378_v12 }
 0x381   : > { %v1419_v50 = vrot.slane %v1411_v14, %v2526_v35  ;;  %v1426_v33 = vrot.slane %v1412_v38, %v2526_v35  ;;  %v1435_v36 = vrot.slane %v1427_v42, %v2526_v35  ;;  %v1442_v45 = vrot.slane %v1428_v43, %v2526_v35 }
 0x382   : > { %v1330_v15 = vpop.permute.xlu0 %1329 }
 0x386   : > { %v1336_v26 = vpop.permute.xlu0 %1335 }
 0x387   : > { %v1379_v29 = vcombine.low %v1324_v11, %v1336_v26  ;;  %v1380_v30 = vcombine.high %v1324_v11, %v1336_v26 }
 0x389   : > { %v1387_v39 = vrot.slane %v1379_v29, %v2520_v23  ;;  %v1394_v20 = vrot.slane %v1380_v30, %v2520_v23 }
 0x38a   : > { %v1342_v17 = vpop.permute.xlu0 %1341 }
 0x38b   : > { %v1395_v32 = vcombine.low %v1330_v15, %v1342_v17  ;;  %v1396_v34 = vcombine.high %v1330_v15, %v1342_v17 }
 0x38d   : > { %v1403_v40 = vrot.slane %v1395_v32, %v2520_v23  ;;  %v1410_v41 = vrot.slane %v1396_v34, %v2520_v23 }
 0x38e   : > { %v1308_v46 = vpop.permute.xlu0 %1307 }
 0x38f   : > { %v1443_v47 = vcombine.low %v1387_v39, %v1403_v40  ;;  %v1444_v48 = vcombine.high %v1387_v39, %v1403_v40  ;;  %v1459_v49 = vcombine.low %v1394_v20, %v1410_v41  ;;  %v1460_v3 = vcombine.high %v1394_v20, %v1410_v41 }
 0x391   : > { %v1451_v44 = vrot.slane %v1443_v47, %v2526_v35  ;;  %v1458_v51 = vrot.slane %v1444_v48, %v2526_v35  ;;  %v1467_v52 = vrot.slane %v1459_v49, %v2526_v35  ;;  %v1474_v53 = vrot.slane %v1460_v3, %v2526_v35 }
 0x392   : > { %v1314_v54 = vpop.permute.xlu0 %1313 }
 0x393   : > { %v1475_v55 = vcombine.low %v1419_v50, %v1451_v44  ;;  %v1476_v56 = vcombine.high %v1419_v50, %v1451_v44  ;;  %v1477_v57 = vcombine.low %v1426_v33, %v1458_v51  ;;  %v1478_v58 = vcombine.high %v1426_v33, %v1458_v51 }
 0x394   : > { %v1479_v59 = vcombine.low %v1435_v36, %v1467_v52  ;;  %v1480_v60 = vcombine.high %v1435_v36, %v1467_v52  ;;  %v1481_v61 = vcombine.low %v1442_v45, %v1474_v53  ;;  %v1482_v62 = vcombine.high %v1442_v45, %v1474_v53 }
 0x395   : > { %v1627_v63 = vsel %vm1626_vm10, -inf, %v1475_v55  ;;  %v1628_v0 = vsel %vm1626_vm10, -inf, %v1476_v56  ;;  %v1629_v4 = vsel %vm1626_vm10, -inf, %v1477_v57  ;;  %v1630_v5 = vsel %vm1626_vm10, -inf, %v1478_v58 }
 0x396   : > { %v1631_v6 = vsel %vm1626_vm10, -inf, %v1479_v59  ;;  %v1632_v7 = vsel %vm1626_vm10, -inf, %v1480_v60  ;;  %v1633_v8 = vsel %vm1626_vm10, -inf, %v1481_v61  ;;  %v1634_v9 = vsel %vm1626_vm10, -inf, %v1482_v62  ;;  %1644 = vst.msk [vmem:[%s2546_s24] sm:$0xff] %vm1643_vm11, %v1627_v63  ;;  %1645 = vst.msk [vmem:[%s2546_s24 + $0x8] sm:$0xff] %vm1643_vm11, %v1628_v0  ;;  %v1320_v10 = vpop.permute.xlu0 %1319 }
 0x397   : > { %1646 = vst.msk [vmem:[%s2546_s24 + $0x10] sm:$0xff] %vm1643_vm11, %v1629_v4  ;;  %1647 = vst.msk [vmem:[%s2546_s24 + $0x18] sm:$0xff] %vm1643_vm11, %v1630_v5  ;;  %v1499_v15 = vcombine.low %v1308_v46, %v1320_v10  ;;  %v1483_v18 = vcombine.low %v2505_v2, %v1314_v54  ;;  %v1500_v19 = vcombine.high %v1308_v46, %v1320_v10 }
 0x398   : > { %1648 = vst.msk [vmem:[%s2546_s24 + $0x20] sm:$0xff] %vm1643_vm11, %v1631_v6  ;;  %1649 = vst.msk [vmem:[%s2546_s24 + $0x28] sm:$0xff] %vm1643_vm11, %v1632_v7  ;;  %v1484_v24 = vcombine.high %v2505_v2, %v1314_v54  ;;  %v904_v62 = vadd.f32 %v1843_v22, %v2495_v16 }
 0x399   : > { %1650 = vst.msk [vmem:[%s2546_s24 + $0x30] sm:$0xff] %vm1643_vm11, %v1633_v8  ;;  %1651 = vst.msk [vmem:[%s2546_s24 + $0x38] sm:$0xff] %vm1643_vm11, %v1634_v9  ;;  %v1507_v25 = vrot.slane %v1499_v15, %v2520_v23  ;;  %v1491_v1 = vrot.slane %v1483_v18, %v2520_v23  ;;  %v1514_v28 = vrot.slane %v1500_v19, %v2520_v23 }
 0x39a   : > { %v1326_v11 = vpop.permute.xlu0 %1325  ;;  %v1498_v12 = vrot.slane %v1484_v24, %v2520_v23 }
 0x39b   : > { %v1547_v17 = vcombine.low %v1491_v1, %v1507_v25  ;;  %v1548_v32 = vcombine.high %v1491_v1, %v1507_v25 }
 0x39c   : > { %v1563_v38 = vcombine.low %v1498_v12, %v1514_v28  ;;  %v1564_v39 = vcombine.high %v1498_v12, %v1514_v28 }
 0x39d   : > { %v1555_v43 = vrot.slane %v1547_v17, %v2526_v35  ;;  %v1562_v46 = vrot.slane %v1548_v32, %v2526_v35 }
 0x39e   : > { %v1332_v13 = vpop.permute.xlu0 %1331  ;;  %v1571_v3 = vrot.slane %v1563_v38, %v2526_v35  ;;  %v1578_v50 = vrot.slane %v1564_v39, %v2526_v35 }
 0x3a2   : > { %v1338_v21 = vpop.permute.xlu0 %1337 }
 0x3a3   : > { %v1515_v26 = vcombine.low %v1326_v11, %v1338_v21  ;;  %v1516_v27 = vcombine.high %v1326_v11, %v1338_v21 }
 0x3a5   : > { %v1523_v34 = vrot.slane %v1515_v26, %v2520_v23  ;;  %v1530_v2 = vrot.slane %v1516_v27, %v2520_v23 }
 0x3a6   : > { %v1344_v29 = vpop.permute.xlu0 %1343 }
 0x3a7   : > { %v1531_v30 = vcombine.low %v1332_v13, %v1344_v29  ;;  %v1532_v31 = vcombine.high %v1332_v13, %v1344_v29 }
 0x3a9   : > { %v1539_v37 = vrot.slane %v1531_v30, %v2520_v23  ;;  %v1546_v14 = vrot.slane %v1532_v31, %v2520_v23 }
 0x3ab   : > { %v1579_v20 = vcombine.low %v1523_v34, %v1539_v37  ;;  %v1580_v40 = vcombine.high %v1523_v34, %v1539_v37  ;;  %v1595_v41 = vcombine.low %v1530_v2, %v1546_v14  ;;  %v1596_v42 = vcombine.high %v1530_v2, %v1546_v14 }
 0x3ad   : > { %v1587_v47 = vrot.slane %v1579_v20, %v2526_v35  ;;  %v1594_v48 = vrot.slane %v1580_v40, %v2526_v35  ;;  %v1603_v49 = vrot.slane %v1595_v41, %v2526_v35  ;;  %v1610_v23 = vrot.slane %v1596_v42, %v2526_v35 }
 0x3af   : > { %v1611_v33 = vcombine.low %v1555_v43, %v1587_v47  ;;  %v1612_v44 = vcombine.high %v1555_v43, %v1587_v47  ;;  %v1613_v51 = vcombine.low %v1562_v46, %v1594_v48  ;;  %v1614_v52 = vcombine.high %v1562_v46, %v1594_v48 }
 0x3b0   : > { %v1615_v53 = vcombine.low %v1571_v3, %v1603_v49  ;;  %v1616_v36 = vcombine.high %v1571_v3, %v1603_v49  ;;  %v1617_v45 = vcombine.low %v1578_v50, %v1610_v23  ;;  %v1618_v54 = vcombine.high %v1578_v50, %v1610_v23 }
 0x3b1   : > { %v1635_v35 = vsel %vm1626_vm10, -inf, %v1611_v33  ;;  %v1636_v55 = vsel %vm1626_vm10, -inf, %v1612_v44  ;;  %v1637_v56 = vsel %vm1626_vm10, -inf, %v1613_v51  ;;  %v1638_v57 = vsel %vm1626_vm10, -inf, %v1614_v52 }
 0x3b2   : > { %v1639_v58 = vsel %vm1626_vm10, -inf, %v1615_v53  ;;  %v1640_v59 = vsel %vm1626_vm10, -inf, %v1616_v36  ;;  %v1641_v60 = vsel %vm1626_vm10, -inf, %v1617_v45  ;;  %v1642_v61 = vsel %vm1626_vm10, -inf, %v1618_v54  ;;  %1652 = vst.msk [vmem:[%s2546_s24 + $0x40] sm:$0xff] %vm1643_vm11, %v1635_v35  ;;  %1653 = vst.msk [vmem:[%s2546_s24 + $0x48] sm:$0xff] %vm1643_vm11, %v1636_v55 }
 0x3b3   : > { %1654 = vst.msk [vmem:[%s2546_s24 + $0x50] sm:$0xff] %vm1643_vm11, %v1637_v56  ;;  %1655 = vst.msk [vmem:[%s2546_s24 + $0x58] sm:$0xff] %vm1643_vm11, %v1638_v57 }
 0x3b4   : > { %1656 = vst.msk [vmem:[%s2546_s24 + $0x60] sm:$0xff] %vm1643_vm11, %v1639_v58  ;;  %1657 = vst.msk [vmem:[%s2546_s24 + $0x68] sm:$0xff] %vm1643_vm11, %v1640_v59 }
 0x3b5   : > { %1658 = vst.msk [vmem:[%s2546_s24 + $0x70] sm:$0xff] %vm1643_vm11, %v1641_v60  ;;  %1659 = vst.msk [vmem:[%s2546_s24 + $0x78] sm:$0xff] %vm1643_vm11, %v1642_v61  ;;  %s2208_s24 = smov [#allocation2]  }
 0x3b6   : > { %s2120_s21 = sshll.u32 %s2208_s24, 4  ;;  %s2121_s21 = int_to_ptr.vmem [resolvable:$false] %s2120_s21 }
 0x3b7   : > { %v914_v63 = vpop.permute.xlu0 %913  ;;  %s2122_s27 = scalar_lea.vmem %s2121_s21, 256  ;;  %p2123_p1 = scmp.lt.s32.totalorder %s2646_s17, %s2121_s21 }
 0x3b8   : > { %vm915_vm13 = vcmp.eq.s32.totalorder %v914_v63, 1  ;;  %p2124_p2 = scmp.lt.s32.totalorder %s2122_s27, %s2116_s19 }
 0x3b9   : > { %v916_v0 = vsel %vm915_vm13, 0.0, %v904_v62 }
 0x3ba   : > { %918 = vst.msk [vmem:[%s538_s28] sm:$0xff] %vm917_vm12, %v916_v0  ;;  %p2125_p3 = por %p2124_p2, %p2123_p1 }
 0x3bc   : > { %p2126_p5 = pnand %p2125_p3, %p2119_p0 }
 0x3be   : > { %2129 = shalt.err (!%p2126_p5)
}
 0x3bf   : > { %s2130_s22 = scalar_lea.hbm %s2644_s1, 128  ;;  %s2134_s28 = scalar_lea.hbm %s2707_s14, 256 }
 0x3c0   : > { %p2131_p6 = scmp.ne.s32.totalorder %s2644_s1, %s2130_s22  ;;  %p2135_p10 = scmp.lt.u32.totalorder %s2644_s1, %s2707_s14 }
 0x3c1   : > { %p2136_p11 = scmp.lt.u32.totalorder %s2134_s28, %s2130_s22  ;;  %p2138_p13 = scmp.lt.u32.totalorder %s2130_s22, %s2644_s1 }
 0x3c2   : > { %p2132_p7 = pnand %p2131_p6, %p2324_p4 }
 0x3c3   : > { %p2137_p12 = por %p2136_p11, %p2135_p10 }
 0x3c4   : > { %p2133_p9 = pneg %p2132_p7 }
 0x3c5   : > { %p2139_p0 = por %p2138_p13, %p2137_p12 }
 0x3c7   : > { %p2140_p1 = pnand %p2139_p0, %p2133_p9 }
 0x3c9   : > { %2143 = shalt.err (!%p2140_p1)
}
 0x3ca   : > { %1992 = dma.vmem_to_hbm [thread:$0]  (%p2324_p4), %s2646_s17, 128, %s2644_s1, %s1669_s16  }
 0x3cb PF: > { %p1998_p2 = scmp.ge.s32.totalorder %s2194_s18, 2  ;;  %s1709_s19 = sand.u32 1, %s2174_s29  }
 0x3cc   : > { %s1710_s24 = scalar_lea.sflag [#allocation3], %s1709_s19 }
 0x3cd   : > { %p1995_p3 = pnand %p1998_p2, %p2331_p8 }
 0x3cf   : > { %2169 = dma.done.wait (!%p1995_p3), %s1710_s24, 128  }
 0x3d0   : > { %2171 = vsyncadd (!%p1995_p3), %s1710_s24, 4294967168  ;;  %s28_s18 = sadd.s32 1, %s2194_s18   ;;  %s2721_s21 = sld [smem:[#allocation5_spill]] }
 0x3d1   : > { %p25_p5 = scmp.ge.s32.totalorder %s28_s18, 4   ;;  %s2722_s15 = sld [smem:[#allocation8_spill]] }
 0x3d2   : > { %s2723_s16 = sld [smem:[#allocation6_spill]]  ;;  %s2724_s17 = sld [smem:[#allocation7_spill]] }
 0x3d3   : > { %s2725_s29 = smov %s2178_s30  ;;  %27 = sbr.rel (!%p25_p5) target bundleno = 7 (0x7), region = 128 }
 0x3d6   : > { %s2726_s30 = smov %s2721_s21 }
 0x3da   :  { %1715 = vsyncpa [#allocation3], 1 }
 0x3db   :  { %1717 = vsyncpa [#allocation3 + $0x1], 1 }

</bundles_post_ra>
